<compile_context>
chip_gen: v6e
topology: v6e:2x2x1
jax: 0.10.0
libtpu: 0.0.40
codegen_flags: <defaults>
</compile_context>

<pallas_src>
import functools

import jax
import jax.numpy as jnp
from jax.experimental import pallas as pl
from jax.experimental.pallas import tpu as pltpu

_LANE = 128
_NEG_INF = -1e30
_BN_EPS = 1e-5


# ---------------------------------------------------------------------------
# helpers
# ---------------------------------------------------------------------------
def _round_up(x, m):
    return ((x + m - 1) // m) * m


def _pad2d(a, rows, cols):
    r, c = a.shape
    return jnp.pad(a, ((0, rows - r), (0, cols - c)))


def _full_spec(shape):
    # single-tile block = whole (padded, lane-dense) array; grid=() -> one step
    return pl.BlockSpec(shape, lambda: tuple(0 for _ in shape))


@functools.lru_cache(maxsize=1)
def _vmem_capacity_bytes():
    try:
        return int(pltpu.get_tpu_info().vmem_capacity_bytes)
    except Exception:
        return 64 * 1024 * 1024  # conservative: v7x per-TensorCore VMEM


def _vmem_limit_for(est_bytes):
    budget = int(0.9 * _vmem_capacity_bytes())
    return int(min(budget, max(2 * est_bytes + (8 << 20), 32 << 20)))


def _pick_tile(n_pad, target=512):
    t = min(target, n_pad)
    while n_pad % t:
        t -= _LANE
    return t


# ---------------------------------------------------------------------------
# parameter preprocessing (hoisted out of the per-step forward)
# ---------------------------------------------------------------------------
def prepare_gcn_params(params, return_embeds=False, eps=_BN_EPS):
    """Fold eval-mode BatchNorm + conv bias into (W', shift'), pad lane-dense,
    cast matmul operands to bf16.  Call ONCE per parameter set and reuse."""
    num_layers = len(params["convs"])
    num_hidden = num_layers - 1

    hidden = []
    for i in range(num_hidden):
        w, b = params["convs"][i]
        gamma, beta, mean, var = params["bns"][i]
        scale = gamma / jnp.sqrt(var + eps)          # (1, Cout)
        shift = beta - mean * scale                  # (1, Cout)
        w_folded = w * scale                         # per-output-channel scale
        shift_folded = b * scale + shift             # conv bias folded in
        ci, co = w.shape
        ci_p, co_p = _round_up(ci, _LANE), _round_up(co, _LANE)
        hidden.append((
            _pad2d(w_folded, ci_p, co_p).astype(jnp.bfloat16),
            _pad2d(shift_folded, 1, co_p).astype(jnp.float32),  # zero pad: ReLU-safe
        ))

    w, b = params["convs"][-1]
    ci, co = w.shape
    ci_p, co_p = _round_up(ci, _LANE), _round_up(co, _LANE)
    b_p = _pad2d(b, 1, co_p).astype(jnp.float32)
    apply_log_softmax = not return_embeds
    if apply_log_softmax:
        # padded class columns get a large negative so log_softmax ignores them
        col_valid = jnp.arange(co_p) < co
        b_p = b_p + jnp.where(col_valid, 0.0, _NEG_INF)[None, :]
    final = (_pad2d(w, ci_p, co_p).astype(jnp.bfloat16), b_p)

    cin = params["convs"][0][0].shape[0]
    return {
        "hidden": hidden,
        "final": final,
        "cin": cin,
        "cin_pad": _round_up(cin, _LANE),
        "cout": co,
        "cout_pad": co_p,
        "apply_log_softmax": apply_log_softmax,
    }


# ---------------------------------------------------------------------------
# path A: fully fused kernel (all layers in one pallas_call), small/medium N
# ---------------------------------------------------------------------------
def _make_fused_gcn_kernel(num_hidden, apply_log_softmax):
    """kernel(adj, x, W'_1, shift'_1, ..., W'_H, shift'_H, W_L, b_L, out)."""

    def kernel(*refs):
        adj_ref, x_ref = refs[0], refs[1]
        o_ref = refs[-1]
        layer_refs = refs[2:-1]

        adj = adj_ref[...]          # bf16 (native MXU input)
        h = x_ref[...]              # bf16

        for l in range(num_hidden):
            w = layer_refs[2 * l][...]             # bf16 (BN folded in)
            shift = layer_refs[2 * l + 1][...]     # f32
            hw = jnp.dot(h, w, preferred_element_type=jnp.float32)
            ah = jnp.dot(adj, hw.astype(jnp.bfloat16),
                         preferred_element_type=jnp.float32)
            h = jnp.maximum(ah + shift, 0.0).astype(jnp.bfloat16)
            # eval-mode dropout is the identity.

        w = layer_refs[2 * num_hidden][...]        # bf16
        b = layer_refs[2 * num_hidden + 1][...]    # f32 (-1e30 on padded classes)
        hw = jnp.dot(h, w, preferred_element_type=jnp.float32)
        logits = jnp.dot(adj, hw.astype(jnp.bfloat16),
                         preferred_element_type=jnp.float32) + b

        if apply_log_softmax:
            # f32 log_softmax over dim=1; padded classes hold -1e30 -> vanish.
            m = jnp.max(logits, axis=1, keepdims=True)
            z = logits - m
            lse = jnp.log(jnp.sum(jnp.exp(z), axis=1, keepdims=True))
            o_ref[...] = z - lse
        else:
            o_ref[...] = logits

    return kernel


def _fused_forward(prep, adj_p, x_p):
    num_hidden = len(prep["hidden"])
    n_pad = adj_p.shape[0]
    co_p = prep["cout_pad"]

    args = [adj_p, x_p]
    for w_p, s_p in prep["hidden"]:
        args += [w_p, s_p]
    args += list(prep["final"])
    in_specs = [_full_spec(a.shape) for a in args]

    in_bytes = sum(int(a.size) * a.dtype.itemsize for a in args)
    cmax_pad = max([prep["cin_pad"], co_p] + [w.shape[1] for w, _ in prep["hidden"]])
    est = in_bytes + n_pad * co_p * 4 + 3 * n_pad * cmax_pad * 4

    kernel = _make_fused_gcn_kernel(num_hidden, prep["apply_log_softmax"])
    return pl.pallas_call(
        kernel,
        out_shape=jax.ShapeDtypeStruct((n_pad, co_p), jnp.float32),
        grid=(),
        in_specs=in_specs,
        out_specs=_full_spec((n_pad, co_p)),
        compiler_params=pltpu.CompilerParams(vmem_limit_bytes=_vmem_limit_for(est)),
    )(*args)


# ---------------------------------------------------------------------------
# path B: tiled / streamed adjacency (per-layer grid kernels), large N
# ---------------------------------------------------------------------------
def _hw_kernel(h_ref, w_ref, o_ref):
    o_ref[...] = jnp.dot(h_ref[...], w_ref[...],
                         preferred_element_type=jnp.float32).astype(o_ref.dtype)


def _hw_call(h_p, w_p, tm):
    # hW = h @ W', row-tiled over N so only (tm, C) tiles are VMEM-resident.
    n_pad, ci_p = h_p.shape
    co_p = w_p.shape[1]
    est = 2 * (tm * ci_p * 2 + tm * co_p * 2) + ci_p * co_p * 2
    return pl.pallas_call(
        _hw_kernel,
        out_shape=jax.ShapeDtypeStruct((n_pad, co_p), jnp.bfloat16),
        grid=(n_pad // tm,),
        in_specs=[pl.BlockSpec((tm, ci_p), lambda i: (i, 0)),
                  pl.BlockSpec((ci_p, co_p), lambda i: (0, 0))],
        out_specs=pl.BlockSpec((tm, co_p), lambda i: (i, 0)),
        compiler_params=pltpu.CompilerParams(
            dimension_semantics=("parallel",),
            vmem_limit_bytes=_vmem_limit_for(est)),
    )(h_p, w_p)


def _make_adj_kernel(mode):
    # out_tile = f(adj_row_tiles @ hW + shift); adj streamed over the k axis.
    def kernel(adj_ref, hw_ref, shift_ref, o_ref, acc_ref):
        k = pl.program_id(1)

        @pl.when(k == 0)
        def _():
            acc_ref[...] = jnp.zeros_like(acc_ref)

        acc_ref[...] += jnp.dot(adj_ref[...], hw_ref[...],
                                preferred_element_type=jnp.float32)

        @pl.when(k == pl.num_programs(1) - 1)
        def _():
            r = acc_ref[...] + shift_ref[...]          # f32 bias/shift add
            if mode == "relu":
                o_ref[...] = jnp.maximum(r, 0.0).astype(o_ref.dtype)
            elif mode == "logsoftmax":
                m = jnp.max(r, axis=1, keepdims=True)
                z = r - m
                lse = jnp.log(jnp.sum(jnp.exp(z), axis=1, keepdims=True))
                o_ref[...] = (z - lse).astype(o_ref.dtype)
            else:
                o_ref[...] = r.astype(o_ref.dtype)

    return kernel


def _adj_call(adj_p, hw_p, shift_p, mode, out_dtype, tm, tk):
    n_pad = adj_p.shape[0]
    co_p = hw_p.shape[1]
    est = 2 * (tm * tk * 2 + tk * co_p * 2 + tm * co_p * 4) + tm * co_p * 4
    return pl.pallas_call(
        _make_adj_kernel(mode),
        out_shape=jax.ShapeDtypeStruct((n_pad, co_p), out_dtype),
        grid=(n_pad // tm, n_pad // tk),
        in_specs=[pl.BlockSpec((tm, tk), lambda i, k: (i, k)),
                  pl.BlockSpec((tk, co_p), lambda i, k: (k, 0)),
                  pl.BlockSpec((1, co_p), lambda i, k: (0, 0))],
        out_specs=pl.BlockSpec((tm, co_p), lambda i, k: (i, 0)),
        scratch_shapes=[pltpu.VMEM((tm, co_p), jnp.float32)],
        compiler_params=pltpu.CompilerParams(
            dimension_semantics=("parallel", "arbitrary"),
            vmem_limit_bytes=_vmem_limit_for(est)),
    )(adj_p, hw_p, shift_p)


def _tiled_forward(prep, adj_p, x_p):
    n_pad = adj_p.shape[0]
    tm = _pick_tile(n_pad)
    tk = _pick_tile(n_pad)

    h = x_p  # bf16
    for w_p, s_p in prep["hidden"]:
        hw = _hw_call(h, w_p, tm)
        h = _adj_call(adj_p, hw, s_p, "relu", jnp.bfloat16, tm, tk)
        # eval-mode dropout is the identity.

    w_p, b_p = prep["final"]
    hw = _hw_call(h, w_p, tm)
    mode = "logsoftmax" if prep["apply_log_softmax"] else "none"
    return _adj_call(adj_p, hw, b_p, mode, jnp.float32, tm, tk)


# ---------------------------------------------------------------------------
# forward (eval mode)
# ---------------------------------------------------------------------------
def gcn_apply(prep, x, adj_t, force_tiled=False):
    n = x.shape[0]
    n_pad = _round_up(n, _LANE)
    adj_p = _pad2d(adj_t.astype(jnp.bfloat16), n_pad, n_pad)
    x_p = _pad2d(x.astype(jnp.bfloat16), n_pad, prep["cin_pad"])

    # fused-vs-streamed crossover derived from this chip's VMEM capacity
    # (64 MiB/TC on v7x vs 128 MiB on v5e/v6e).
    weight_bytes = sum(int(a.size) * a.dtype.itemsize
                       for pair in (prep["hidden"] + [prep["final"]]) for a in pair)
    cmax_pad = max([prep["cin_pad"], prep["cout_pad"]]
                   + [w.shape[1] for w, _ in prep["hidden"]])
    fused_need = (int(adj_p.size) * 2 + int(x_p.size) * 2 + weight_bytes
                  + n_pad * prep["cout_pad"] * 4 + 3 * n_pad * cmax_pad * 4)
    crossover = int(0.45 * _vmem_capacity_bytes())
    use_tiled = force_tiled or fused_need > crossover

    out_p = _tiled_forward(prep, adj_p, x_p) if use_tiled else _fused_forward(prep, adj_p, x_p)
    return out_p[:n, :prep["cout"]]  # slice off row / class padding


def gcn_forward(params, x, adj_t, dropout=0.5, return_embeds=False):
    # Convenience wrapper; prefer prepare_gcn_params(...) once + gcn_apply(...).
    del dropout  # eval mode: F.dropout is the identity
    return gcn_apply(prepare_gcn_params(params, return_embeds), x, adj_t)


# ---------------------------------------------------------------------------
# parameter init (mirrors GCNConv + BatchNorm1d shapes)
# ---------------------------------------------------------------------------
def init_gcn_params(key, input_dim, hidden_dim, output_dim, num_layers):
    dims = [input_dim] + [hidden_dim] * (num_layers - 1) + [output_dim]
    params = {"convs": [], "bns": []}
    for i in range(num_layers):
        key, kw = jax.random.split(key)
        cin, cout = dims[i], dims[i + 1]
        w = jax.random.normal(kw, (cin, cout), jnp.float32) * (1.0 / jnp.sqrt(cin))
        b = jnp.zeros((1, cout), jnp.float32)
        params["convs"].append((w, b))
    for _ in range(num_layers - 1):
        key, k1, k2, k3, k4 = jax.random.split(key, 5)
        gamma = 1.0 + 0.1 * jax.random.normal(k1, (1, hidden_dim), jnp.float32)
        beta = 0.1 * jax.random.normal(k2, (1, hidden_dim), jnp.float32)
        running_mean = 0.1 * jax.random.normal(k3, (1, hidden_dim), jnp.float32)
        running_var = jax.random.uniform(
            k4, (1, hidden_dim), jnp.float32, minval=0.5, maxval=1.5
        )
        params["bns"].append((gamma, beta, running_mean, running_var))
    return params


# ---------------------------------------------------------------------------
# main
# ---------------------------------------------------------------------------
if __name__ == "__main__":
    key = jax.random.PRNGKey(0)

    N = 32            # number of graph nodes
    input_dim = 16
    hidden_dim = 32
    output_dim = 8
    num_layers = 3

    kx, ka, kp = jax.random.split(key, 3)

    x = jax.random.normal(kx, (N, input_dim), jnp.float32)

    # random undirected graph -> dense normalized adjacency D^-1/2 (A+I) D^-1/2
    a = (jax.random.uniform(ka, (N, N)) < 0.2).astype(jnp.float32)
    a = jnp.maximum(a, a.T)
    a = a.at[jnp.arange(N), jnp.arange(N)].set(1.0)
    deg = jnp.sum(a, axis=1)
    d_inv_sqrt = 1.0 / jnp.sqrt(deg)
    adj_t = a * d_inv_sqrt[:, None] * d_inv_sqrt[None, :]

    params = init_gcn_params(kp, input_dim, hidden_dim, output_dim, num_layers)

    # hoisted: fold BN + bias, pad, cast — once per parameter set
    prep = prepare_gcn_params(params, return_embeds=False)

    out_fused = jax.block_until_ready(gcn_apply(prep, x, adj_t))
    assert out_fused.shape == (N, output_dim)
    assert jnp.allclose(jnp.sum(jnp.exp(out_fused), axis=1), 1.0, atol=1e-3)

    # exercise the streamed/tiled adjacency path and cross-check vs fused
    out_tiled = jax.block_until_ready(gcn_apply(prep, x, adj_t, force_tiled=True))
    assert out_tiled.shape == (N, output_dim)
    assert jnp.allclose(out_fused, out_tiled, atol=5e-2, rtol=5e-2)

    # return_embeds path (no log-softmax)
    prep_e = prepare_gcn_params(params, return_embeds=True)
    emb = jax.block_until_ready(gcn_apply(prep_e, x, adj_t))
    assert emb.shape == (N, output_dim)

    print("KERNEL_OK")
</pallas_src>

<mosaic_0001>
module attributes {stable_mosaic.version = 11 : i64} {
  func.func @kernel(%arg0: memref<128x128xbf16, #tpu.memory_space<vmem>>, %arg1: memref<128x128xbf16, #tpu.memory_space<vmem>>, %arg2: memref<128x128xbf16, #tpu.memory_space<vmem>>, %arg3: memref<1x128xf32, #tpu.memory_space<vmem>>, %arg4: memref<128x128xbf16, #tpu.memory_space<vmem>>, %arg5: memref<1x128xf32, #tpu.memory_space<vmem>>, %arg6: memref<128x128xbf16, #tpu.memory_space<vmem>>, %arg7: memref<1x128xf32, #tpu.memory_space<vmem>>, %arg8: memref<128x128xf32, #tpu.memory_space<vmem>>) attributes {dimension_semantics = [], scalar_prefetch = 0 : i64, scratch_operands = 0 : i64, tpu.core_type = #tpu.core_type<tc>} {
    %c0 = arith.constant 0 : index
    %c0_0 = arith.constant 0 : index
    %0 = vector.load %arg0[%c0, %c0_0] : memref<128x128xbf16, #tpu.memory_space<vmem>>, vector<128x128xbf16>
    %c0_1 = arith.constant 0 : index
    %c0_2 = arith.constant 0 : index
    %1 = vector.load %arg1[%c0_1, %c0_2] : memref<128x128xbf16, #tpu.memory_space<vmem>>, vector<128x128xbf16>
    %c0_3 = arith.constant 0 : index
    %c0_4 = arith.constant 0 : index
    %2 = vector.load %arg2[%c0_3, %c0_4] : memref<128x128xbf16, #tpu.memory_space<vmem>>, vector<128x128xbf16>
    %c0_5 = arith.constant 0 : index
    %c0_6 = arith.constant 0 : index
    %3 = vector.load %arg3[%c0_5, %c0_6] : memref<1x128xf32, #tpu.memory_space<vmem>>, vector<1x128xf32>
    %cst = arith.constant dense<0.000000e+00> : vector<128x128xf32>
    %4 = tpu.matmul %1, %2, %cst {dimension_numbers = #tpu.dot_dimension_numbers<[1], [0], [0], [1], [0, 0, 1, 1], [], []>} : vector<128x128xbf16>, vector<128x128xbf16>, vector<128x128xf32> -> vector<128x128xf32>
    %5 = arith.truncf %4 : vector<128x128xf32> to vector<128x128xbf16>
    %cst_7 = arith.constant dense<0.000000e+00> : vector<128x128xf32>
    %6 = tpu.matmul %0, %5, %cst_7 {dimension_numbers = #tpu.dot_dimension_numbers<[1], [0], [0], [1], [0, 0, 1, 1], [], []>} : vector<128x128xbf16>, vector<128x128xbf16>, vector<128x128xf32> -> vector<128x128xf32>
    %7 = vector.broadcast %3 : vector<1x128xf32> to vector<128x128xf32>
    %8 = arith.addf %6, %7 : vector<128x128xf32>
    %cst_8 = arith.constant 0.000000e+00 : f32
    %9 = vector.broadcast %cst_8 : f32 to vector<128x128xf32>
    %10 = arith.maximumf %8, %9 : vector<128x128xf32>
    %11 = arith.truncf %10 : vector<128x128xf32> to vector<128x128xbf16>
    %c0_9 = arith.constant 0 : index
    %c0_10 = arith.constant 0 : index
    %12 = vector.load %arg4[%c0_9, %c0_10] : memref<128x128xbf16, #tpu.memory_space<vmem>>, vector<128x128xbf16>
    %c0_11 = arith.constant 0 : index
    %c0_12 = arith.constant 0 : index
    %13 = vector.load %arg5[%c0_11, %c0_12] : memref<1x128xf32, #tpu.memory_space<vmem>>, vector<1x128xf32>
    %cst_13 = arith.constant dense<0.000000e+00> : vector<128x128xf32>
    %14 = tpu.matmul %11, %12, %cst_13 {dimension_numbers = #tpu.dot_dimension_numbers<[1], [0], [0], [1], [0, 0, 1, 1], [], []>} : vector<128x128xbf16>, vector<128x128xbf16>, vector<128x128xf32> -> vector<128x128xf32>
    %15 = arith.truncf %14 : vector<128x128xf32> to vector<128x128xbf16>
    %cst_14 = arith.constant dense<0.000000e+00> : vector<128x128xf32>
    %16 = tpu.matmul %0, %15, %cst_14 {dimension_numbers = #tpu.dot_dimension_numbers<[1], [0], [0], [1], [0, 0, 1, 1], [], []>} : vector<128x128xbf16>, vector<128x128xbf16>, vector<128x128xf32> -> vector<128x128xf32>
    %17 = vector.broadcast %13 : vector<1x128xf32> to vector<128x128xf32>
    %18 = arith.addf %16, %17 : vector<128x128xf32>
    %cst_15 = arith.constant 0.000000e+00 : f32
    %19 = vector.broadcast %cst_15 : f32 to vector<128x128xf32>
    %20 = arith.maximumf %18, %19 : vector<128x128xf32>
    %21 = arith.truncf %20 : vector<128x128xf32> to vector<128x128xbf16>
    %c0_16 = arith.constant 0 : index
    %c0_17 = arith.constant 0 : index
    %22 = vector.load %arg6[%c0_16, %c0_17] : memref<128x128xbf16, #tpu.memory_space<vmem>>, vector<128x128xbf16>
    %c0_18 = arith.constant 0 : index
    %c0_19 = arith.constant 0 : index
    %23 = vector.load %arg7[%c0_18, %c0_19] : memref<1x128xf32, #tpu.memory_space<vmem>>, vector<1x128xf32>
    %cst_20 = arith.constant dense<0.000000e+00> : vector<128x128xf32>
    %24 = tpu.matmul %21, %22, %cst_20 {dimension_numbers = #tpu.dot_dimension_numbers<[1], [0], [0], [1], [0, 0, 1, 1], [], []>} : vector<128x128xbf16>, vector<128x128xbf16>, vector<128x128xf32> -> vector<128x128xf32>
    %25 = arith.truncf %24 : vector<128x128xf32> to vector<128x128xbf16>
    %cst_21 = arith.constant dense<0.000000e+00> : vector<128x128xf32>
    %26 = tpu.matmul %0, %25, %cst_21 {dimension_numbers = #tpu.dot_dimension_numbers<[1], [0], [0], [1], [0, 0, 1, 1], [], []>} : vector<128x128xbf16>, vector<128x128xbf16>, vector<128x128xf32> -> vector<128x128xf32>
    %27 = vector.broadcast %23 : vector<1x128xf32> to vector<128x128xf32>
    %28 = arith.addf %26, %27 : vector<128x128xf32>
    %cst_22 = arith.constant dense<0xFF800000> : vector<128xf32>
    %29 = vector.multi_reduction <maximumf>, %28, %cst_22 [1] : vector<128x128xf32> to vector<128xf32>
    %30 = vector.shape_cast %29 : vector<128xf32> to vector<128x1xf32>
    %31 = vector.broadcast %30 : vector<128x1xf32> to vector<128x128xf32>
    %32 = arith.subf %28, %31 : vector<128x128xf32>
    %33 = math.exp %32 : vector<128x128xf32>
    %cst_23 = arith.constant dense<0.000000e+00> : vector<128xf32>
    %34 = vector.multi_reduction <add>, %33, %cst_23 [1] : vector<128x128xf32> to vector<128xf32>
    %35 = vector.shape_cast %34 : vector<128xf32> to vector<128x1xf32>
    %36 = math.log %35 : vector<128x1xf32>
    %37 = vector.broadcast %36 : vector<128x1xf32> to vector<128x128xf32>
    %38 = arith.subf %32, %37 : vector<128x128xf32>
    %c0_24 = arith.constant 0 : index
    %c0_25 = arith.constant 0 : index
    %39 = vector.load %arg8[%c0_24, %c0_25] : memref<128x128xf32, #tpu.memory_space<vmem>>, vector<128x128xf32>
    tpu.vector_store %arg8[%c0_24, %c0_25], %38 {strides = array<i32>} : memref<128x128xf32, #tpu.memory_space<vmem>>, vector<128x128xf32>,
    return
  }
}

</mosaic_0001>

<bundles_post_ra>
// kernel: tpu_custom_call.1
= control target key start
LH: loop header
LB: loop body
LE: loop exit
PB: predicated region body
PF: predicated region fallthrough
CT: control target
= control target key end

     0   :  { %13 = vsyncpa [#allocation3], 0  ;;  %s2083_s0 = inlined_call_operand.hbm [shape: bf16[128,128], index: 0, kind: input, shape index: {}]   ;;  %s2084_s1 = inlined_call_operand.hbm [shape: bf16[128,128], index: 1, kind: input, shape index: {}]   ;;  %s2085_s2 = inlined_call_operand.hbm [shape: bf16[128,128], index: 2, kind: input, shape index: {}]   ;;  %s2086_s3 = inlined_call_operand.vmem [shape: f32[1,128], index: 3, kind: input, shape index: {}]   ;;  %s2087_s4 = inlined_call_operand.hbm [shape: bf16[128,128], index: 4, kind: input, shape index: {}]   ;;  %s2088_s5 = inlined_call_operand.vmem [shape: f32[1,128], index: 5, kind: input, shape index: {}]   ;;  %s2089_s6 = inlined_call_operand.hbm [shape: bf16[128,128], index: 6, kind: input, shape index: {}]   ;;  %s2090_s7 = inlined_call_operand.vmem [shape: f32[1,128], index: 7, kind: input, shape index: {}]   ;;  %s2091_s8 = inlined_call_operand.hbm [shape: f32[128,128], index: 8, kind: output, shape index: {}]  }
   0x1   :  { %14 = vsyncpa [#allocation6], 0 }
   0x2   :  { %15 = vsyncpa [#allocation9], 0 }
   0x3   :  { %16 = vsyncpa [#allocation4], 0  ;;  %s1862_s27 = smov [#allocation5]   ;;  %s1863_s29 = smov [#allocation8]  }
   0x4   :  { %s34_s28 = sshll.u32 %s1862_s27, 4  ;;  %s60_s30 = sshll.u32 %s1863_s29, 4  ;;  %s35_s28 = int_to_ptr.vmem [resolvable:$true] %s34_s28  ;;  %s61_s30 = int_to_ptr.vmem [resolvable:$true] %s60_s30 }
   0x5   :  { %s1742_s9 = scalar_lea.vmem %s35_s28, 1024  ;;  %p1747_p1 = scmp.lt.s32.totalorder %s35_s28, %s35_s28 }
   0x6   :  { %p1743_p0 = scmp.ne.s32.totalorder %s35_s28, %s1742_s9  ;;  %p1748_p2 = scmp.lt.s32.totalorder %s1742_s9, %s1742_s9 }
   0x8   :  { %p1749_p3 = por %p1748_p2, %p1747_p1 }
   0xa   :  { %p1750_p4 = pnand %p1749_p3, %p1743_p0 }
   0xc   :  { %1753 = shalt.err (!%p1750_p4)
}
   0xd   :  { %s1864_s10 = smov 64   ;;  %s1865_s11 = smov 4  }
   0xe   :  { %40 = dma.hbm_to_vmem [thread:$0]  %s2084_s1, 1024, %s35_s28, [#allocation6], %s1864_s10, %s1864_s10, %s1865_s11  }
   0xf   :  { %s1762_s14 = scalar_lea.vmem %s61_s30, 1024  ;;  %p1767_p6 = scmp.lt.s32.totalorder %s61_s30, %s61_s30 }
  0x10   :  { %p1763_p5 = scmp.ne.s32.totalorder %s61_s30, %s1762_s14  ;;  %p1768_p7 = scmp.lt.s32.totalorder %s1762_s14, %s1762_s14 }
  0x12   :  { %p1769_p8 = por %p1768_p7, %p1767_p6 }
  0x14   :  { %p1770_p9 = pnand %p1769_p8, %p1763_p5 }
  0x16   :  { %1773 = shalt.err (!%p1770_p9)
}
  0x17   :  { %66 = dma.hbm_to_vmem [thread:$0]  %s2087_s4, 1024, %s61_s30, [#allocation9], %s1864_s10, %s1864_s10, %s1865_s11  }
  0x18   :  { %s1866_s17 = smov [#allocation2]   ;;  %s1867_s19 = smov [#allocation7]  }
  0x19   :  { %s22_s18 = sshll.u32 %s1866_s17, 4  ;;  %s46_s20 = sshll.u32 %s1867_s19, 4  ;;  %s23_s18 = int_to_ptr.vmem [resolvable:$true] %s22_s18  ;;  %s47_s20 = int_to_ptr.vmem [resolvable:$true] %s46_s20 }
  0x1a   :  { %s1782_s1 = scalar_lea.vmem %s23_s18, 1024  ;;  %p1787_p11 = scmp.lt.s32.totalorder %s23_s18, %s23_s18 }
  0x1b   :  { %p1783_p10 = scmp.ne.s32.totalorder %s23_s18, %s1782_s1  ;;  %p1788_p12 = scmp.lt.s32.totalorder %s1782_s1, %s1782_s1 }
  0x1d   :  { %p1789_p13 = por %p1788_p12, %p1787_p11 }
  0x1f   :  { %p1790_p0 = pnand %p1789_p13, %p1783_p10 }
  0x21   :  { %1793 = shalt.err (!%p1790_p0)
}
  0x22   :  { %28 = dma.hbm_to_vmem [thread:$0]  %s2083_s0, 1024, %s23_s18, [#allocation3], %s1864_s10, %s1864_s10, %s1865_s11  }
  0x23   :  { %s1802_s4 = scalar_lea.vmem %s47_s20, 1024  ;;  %p1807_p2 = scmp.lt.s32.totalorder %s47_s20, %s47_s20 }
  0x24   :  { %p1803_p1 = scmp.ne.s32.totalorder %s47_s20, %s1802_s4  ;;  %p1808_p3 = scmp.lt.s32.totalorder %s1802_s4, %s1802_s4 }
  0x26   :  { %p1809_p4 = por %p1808_p3, %p1807_p2 }
  0x28   :  { %p1810_p5 = pnand %p1809_p4, %p1803_p1 }
  0x2a   :  { %1813 = shalt.err (!%p1810_p5)
}
  0x2b   :  { %52 = dma.hbm_to_vmem [thread:$0]  %s2085_s2, 1024, %s47_s20, [#allocation6], %s1864_s10, %s1864_s10, %s1865_s11  }
  0x2c   :  { %s1868_s25 = smov [#allocation10]  }
  0x2d   :  { %s74_s26 = sshll.u32 %s1868_s25, 4  ;;  %s75_s26 = int_to_ptr.vmem [resolvable:$true] %s74_s26 }
  0x2e   :  { %s1822_s27 = scalar_lea.vmem %s75_s26, 1024  ;;  %p1827_p7 = scmp.lt.s32.totalorder %s75_s26, %s75_s26 }
  0x2f   :  { %p1823_p6 = scmp.ne.s32.totalorder %s75_s26, %s1822_s27  ;;  %p1828_p8 = scmp.lt.s32.totalorder %s1822_s27, %s1822_s27 }
  0x31   :  { %p1829_p9 = por %p1828_p8, %p1827_p7 }
  0x33   :  { %p1830_p10 = pnand %p1829_p9, %p1823_p6 }
  0x35   :  { %1833 = shalt.err (!%p1830_p10)
}
  0x36   :  { %80 = dma.hbm_to_vmem [thread:$0]  %s2089_s6, 1024, %s75_s26, [#allocation9], %s1864_s10, %s1864_s10, %s1865_s11  }
  0x37   :  { %1854 = dma.done.wait [#allocation3], 1024  }
  0x38   :  { %1855 = vsyncadd [#allocation3], 4294966272 }
  0x39   :  { %1856 = dma.done.wait [#allocation6], 2048  }
  0x3a   :  { %1857 = vsyncadd [#allocation6], 4294965248 }
  0x3b   :  { %1858 = dma.done.wait [#allocation9], 2048  }
  0x3c   :  { %1859 = vsyncadd [#allocation9], 4294965248  ;;  %v1630_v0 = vld [vmem:[#allocation7 + $0x38] sm:$0xff]   ;;  %v1631_v1 = vld [vmem:[#allocation7 + $0x30] sm:$0xff]  }
  0x3d   :  { %1428 = vmatprep.subr.bf16.mxu0 %v1630_v0  ;;  %v1632_v2 = vld [vmem:[#allocation7 + $0x28] sm:$0xff]   ;;  %v1633_v3 = vld [vmem:[#allocation7 + $0x20] sm:$0xff]   ;;  %v1634_v5 = vld [vmem:[#allocation7 + $0x18] sm:$0xff]  }
  0x3e   :  { %1429 = vmatpush3.bf16.msra.mxu0 %v1630_v0  ;;  %v1638_v4 = vld [vmem:[#allocation5] sm:$0xff]   ;;  %v1635_v6 = vld [vmem:[#allocation7 + $0x10] sm:$0xff]   ;;  %v1636_v7 = vld [vmem:[#allocation7 + $0x8] sm:$0xff]  }
  0x3f   :  { %1430 = vmatprep.subr.bf16.mxu0 %v1631_v1  ;;  %1444 = vmatprep.mubr.bf16.mxu0 %v1638_v4  ;;  %v1637_v8 = vld [vmem:[#allocation7] sm:$0xff]   ;;  %v1639_v9 = vld [vmem:[#allocation5 + $0x8] sm:$0xff]   ;;  %v1640_v10 = vld [vmem:[#allocation5 + $0x10] sm:$0xff]  }
  0x40   :  { %v1641_v11 = vld [vmem:[#allocation5 + $0x18] sm:$0xff]   ;;  %v1642_v12 = vld [vmem:[#allocation5 + $0x20] sm:$0xff]   ;;  %v1643_v13 = vld [vmem:[#allocation5 + $0x28] sm:$0xff]  }
  0x41   :  { %v1644_v14 = vld [vmem:[#allocation5 + $0x30] sm:$0xff]   ;;  %v1645_v15 = vld [vmem:[#allocation5 + $0x38] sm:$0xff]   ;;  %v1947_v16 = vld [vmem:[#allocation2] sm:$0xff]  }
  0x42   :  { %1431 = vmatpush3.bf16.msra.mxu0 %v1631_v1  ;;  %1476 = vmatprep.mubr.bf16.mxu1 %v1947_v16  ;;  %v1654_v17 = vld [vmem:[#allocation8 + $0x38] sm:$0xff]   ;;  %v1655_v18 = vld [vmem:[#allocation8 + $0x30] sm:$0xff]   ;;  %v1656_v19 = vld [vmem:[#allocation8 + $0x28] sm:$0xff]  }
  0x43   :  { %1432 = vmatprep.subr.bf16.mxu0 %v1632_v2  ;;  %v1657_v20 = vld [vmem:[#allocation8 + $0x20] sm:$0xff]   ;;  %v1658_v21 = vld [vmem:[#allocation8 + $0x18] sm:$0xff]   ;;  %v1950_v46 = vld [vmem:[#allocation2 + $0x8] sm:$0xff]  }
  0x44   :  { %v1952_v47 = vld [vmem:[#allocation2 + $0x10] sm:$0xff]   ;;  %v1956_v48 = vld [vmem:[#allocation2 + $0x18] sm:$0xff]   ;;  %v1958_v49 = vld [vmem:[#allocation2 + $0x20] sm:$0xff]  }
  0x45   :  { %v1962_v50 = vld [vmem:[#allocation2 + $0x28] sm:$0xff]   ;;  %v1964_v51 = vld [vmem:[#allocation2 + $0x30] sm:$0xff]   ;;  %v1968_v52 = vld [vmem:[#allocation2 + $0x38] sm:$0xff]  }
  0x46   :  { %1433 = vmatpush3.bf16.msra.mxu0 %v1632_v2  ;;  %v1659_v53 = vld [vmem:[#allocation8 + $0x10] sm:$0xff]   ;;  %v1660_v54 = vld [vmem:[#allocation8 + $0x8] sm:$0xff]   ;;  %v1661_v55 = vld [vmem:[#allocation8] sm:$0xff]  }
  0x47   :  { %1434 = vmatprep.subr.bf16.mxu0 %v1633_v3  ;;  %v1305_v58 = vld [vmem:[%s2086_s3] ss:$0 sm:$0xff] }
  0x4a   :  { %1435 = vmatpush3.bf16.msra.mxu0 %v1633_v3 }
  0x4b   :  { %1436 = vmatprep.subr.bf16.mxu0 %v1634_v5 }
  0x4e   :  { %1437 = vmatpush3.bf16.msra.mxu0 %v1634_v5 }
  0x4f   :  { %1438 = vmatprep.subr.bf16.mxu0 %v1635_v6 }
  0x52   :  { %1439 = vmatpush3.bf16.msra.mxu0 %v1635_v6 }
  0x53   :  { %1440 = vmatprep.subr.bf16.mxu0 %v1636_v7 }
  0x56   :  { %1441 = vmatpush3.bf16.msra.mxu0 %v1636_v7 }
  0x57   :  { %1442 = vmatprep.subr.bf16.mxu0 %v1637_v8 }
  0x5a   :  { %1443 = vmatpush3.bf16.msra.mxu0 %v1637_v8 }
  0x5b   :  { %1492 = vmatprep.subr.bf16.mxu0 %v1654_v17 }
  0x5d   :  { %1445 = vmatmul.mubr.bf16.vlgmr.msra.gmra.mxu0 %v1639_v9 }
  0x5e   :  { %1448 = vmatprep.mubr.bf16.mxu0 %v1640_v10  ;;  %1493 = vmatpush3.bf16.msra.mxu0 %v1654_v17 }
  0x5f   :  { %1494 = vmatprep.subr.bf16.mxu0 %v1655_v18 }
  0x62   :  { %1495 = vmatpush3.bf16.msra.mxu0 %v1655_v18 }
  0x63   :  { %1496 = vmatprep.subr.bf16.mxu0 %v1656_v19 }
  0x65   :  { %1449 = vmatmul.mubr.bf16.gmra.mxu0 %v1641_v11 }
  0x66   :  { %1452 = vmatprep.mubr.bf16.mxu0 %v1642_v12  ;;  %1497 = vmatpush3.bf16.msra.mxu0 %v1656_v19 }
  0x67   :  { %1498 = vmatprep.subr.bf16.mxu0 %v1657_v20 }
  0x6a   :  { %1499 = vmatpush3.bf16.msra.mxu0 %v1657_v20 }
  0x6b   :  { %1500 = vmatprep.subr.bf16.mxu0 %v1658_v21 }
  0x6d   :  { %1453 = vmatmul.mubr.bf16.gmra.mxu0 %v1643_v13 }
  0x6e   :  { %1456 = vmatprep.mubr.bf16.mxu0 %v1644_v14  ;;  %1501 = vmatpush3.bf16.msra.mxu0 %v1658_v21 }
  0x6f   :  { %1502 = vmatprep.subr.bf16.mxu0 %v1659_v53 }
  0x72   :  { %1503 = vmatpush3.bf16.msra.mxu0 %v1659_v53 }
  0x73   :  { %1504 = vmatprep.subr.bf16.mxu0 %v1660_v54 }
  0x75   :  { %1457 = vmatmul.mubr.bf16.gmra.mxu0 %v1645_v15 }
  0x76   :  { %1505 = vmatpush3.bf16.msra.mxu0 %v1660_v54 }
  0x77   :  { %1506 = vmatprep.subr.bf16.mxu0 %v1661_v55 }
  0x7a   :  { %1507 = vmatpush3.bf16.msra.mxu0 %v1661_v55 }
 0x11d   :  { %v1446_v22 = vpop.f32.mrf.mxu0 }
 0x11f   :  { %v278_v23 = vpop.f32.mrf.mxu0 }
 0x121   :  { %v1447_v24 = vpop.f32.mrf.mxu0 }
 0x122   :  { %v342_v44 = vpack.c.bf16 %v1447_v24, %v1446_v22 }
 0x123   :  { %v281_v25 = vpop.f32.mrf.mxu0 }
 0x124   :  { %v341_v45 = vpack.c.bf16 %v281_v25, %v278_v23 }
 0x125   :  { %v1450_v26 = vpop.f32.mrf.mxu0 }
 0x127   :  { %v294_v27 = vpop.f32.mrf.mxu0 }
 0x129   :  { %v1451_v28 = vpop.f32.mrf.mxu0 }
 0x12a   :  { %v344_v42 = vpack.c.bf16 %v1451_v28, %v1450_v26 }
 0x12b   :  { %v297_v29 = vpop.f32.mrf.mxu0 }
 0x12c   :  { %v343_v43 = vpack.c.bf16 %v297_v29, %v294_v27 }
 0x12d   :  { %v1454_v30 = vpop.f32.mrf.mxu0 }
 0x12f   :  { %v310_v31 = vpop.f32.mrf.mxu0 }
 0x131   :  { %v1455_v32 = vpop.f32.mrf.mxu0 }
 0x132   :  { %v346_v40 = vpack.c.bf16 %v1455_v32, %v1454_v30 }
 0x133   :  { %v313_v33 = vpop.f32.mrf.mxu0 }
 0x134   :  { %v345_v41 = vpack.c.bf16 %v313_v33, %v310_v31 }
 0x135   :  { %v1458_v34 = vpop.f32.mrf.mxu0 }
 0x137   :  { %v326_v35 = vpop.f32.mrf.mxu0 }
 0x139   :  { %v1459_v36 = vpop.f32.mrf.mxu0 }
 0x13a   :  { %v348_v37 = vpack.c.bf16 %v1459_v36, %v1458_v34 }
 0x13b   :  { %v329_v38 = vpop.f32.mrf.mxu0 }
 0x13c   :  { %v347_v39 = vpack.c.bf16 %v329_v38, %v326_v35  ;;  %1460 = vmatprep.subr.bf16.mxu1 %v348_v37 }
 0x13d   :  { %1461 = vmatpush3.bf16.msra.mxu1 %v348_v37 }
 0x13e   :  { %1462 = vmatprep.subr.bf16.mxu1 %v347_v39 }
 0x141   :  { %1463 = vmatpush3.bf16.msra.mxu1 %v347_v39 }
 0x142   :  { %1464 = vmatprep.subr.bf16.mxu1 %v346_v40 }
 0x145   :  { %1465 = vmatpush3.bf16.msra.mxu1 %v346_v40 }
 0x146   :  { %1466 = vmatprep.subr.bf16.mxu1 %v345_v41 }
 0x149   :  { %1467 = vmatpush3.bf16.msra.mxu1 %v345_v41 }
 0x14a   :  { %1468 = vmatprep.subr.bf16.mxu1 %v344_v42 }
 0x14d   :  { %1469 = vmatpush3.bf16.msra.mxu1 %v344_v42 }
 0x14e   :  { %1470 = vmatprep.subr.bf16.mxu1 %v343_v43 }
 0x151   :  { %1471 = vmatpush3.bf16.msra.mxu1 %v343_v43 }
 0x152   :  { %1472 = vmatprep.subr.bf16.mxu1 %v342_v44 }
 0x155   :  { %1473 = vmatpush3.bf16.msra.mxu1 %v342_v44 }
 0x156   :  { %1474 = vmatprep.subr.bf16.mxu1 %v341_v45 }
 0x159   :  { %1475 = vmatpush3.bf16.msra.mxu1 %v341_v45 }
 0x15c   :  { %1477 = vmatmul.mubr.bf16.vlgmr.msra.gmra.mxu1 %v1950_v46 }
 0x15d   :  { %1480 = vmatprep.mubr.bf16.mxu1 %v1952_v47 }
 0x164   :  { %1481 = vmatmul.mubr.bf16.gmra.mxu1 %v1956_v48 }
 0x165   :  { %1484 = vmatprep.mubr.bf16.mxu1 %v1958_v49 }
 0x16c   :  { %1485 = vmatmul.mubr.bf16.gmra.mxu1 %v1962_v50 }
 0x16d   :  { %1488 = vmatprep.mubr.bf16.mxu1 %v1964_v51 }
 0x174   :  { %1489 = vmatmul.mubr.bf16.gmra.mxu1 %v1968_v52 }
 0x175   :  { %1540 = vmatprep.mubr.bf16.mxu1 %v1947_v16 }
 0x21c   :  { %v1478_v56 = vpop.f32.mrf.mxu1 }
 0x21d   :  { %v446_v62 = vadd.f32 %v1478_v56, %v1305_v58 }
 0x21e   :  { %v437_v57 = vpop.f32.mrf.mxu1 }
 0x21f   :  { %v438_v60 = vadd.f32 %v1305_v58, %v437_v57  ;;  %v502_v5 = vmax.f32 %v446_v62, 0.0  ;;  %v1662_v57 = vld [vmem:[#allocation10 + $0x38] sm:$0xff]  }
 0x220   :  { %v1479_v59 = vpop.f32.mrf.mxu1  ;;  %1556 = vmatprep.subr.bf16.mxu0 %v1662_v57 }
 0x221   :  { %v449_v61 = vadd.f32 %v1479_v59, %v1305_v58  ;;  %v500_v3 = vmax.f32 %v438_v60, 0.0  ;;  %v1663_v59 = vld [vmem:[#allocation10 + $0x30] sm:$0xff]   ;;  %v1664_v60 = vld [vmem:[#allocation10 + $0x28] sm:$0xff]  }
 0x222   :  { %v440_v63 = vpop.f32.mrf.mxu1 }
 0x223   :  { %v441_v0 = vadd.f32 %v1305_v58, %v440_v63  ;;  %v503_v1 = vmax.f32 %v449_v61, 0.0  ;;  %v1665_v61 = vld [vmem:[#allocation10 + $0x20] sm:$0xff]  }
 0x224   :  { %v1482_v2 = vpop.f32.mrf.mxu1 }
 0x225   :  { %v501_v4 = vmax.f32 %v441_v0, 0.0  ;;  %v517_v8 = vpack.c.bf16 %v503_v1, %v502_v5  ;;  %v462_v12 = vadd.f32 %v1482_v2, %v1305_v58 }
 0x226   :  { %v453_v6 = vpop.f32.mrf.mxu1 }
 0x227   :  { %v516_v7 = vpack.c.bf16 %v501_v4, %v500_v3  ;;  %v454_v10 = vadd.f32 %v1305_v58, %v453_v6  ;;  %v506_v20 = vmax.f32 %v462_v12, 0.0 }
 0x228   :  { %v1483_v9 = vpop.f32.mrf.mxu1 }
 0x229   :  { %v465_v11 = vadd.f32 %v1483_v9, %v1305_v58  ;;  %1508 = vmatprep.mubr.bf16.mxu0 %v516_v7  ;;  %v504_v18 = vmax.f32 %v454_v10, 0.0 }
 0x22a   :  { %v456_v13 = vpop.f32.mrf.mxu1  ;;  %1509 = vmatmul.mubr.bf16.vlgmr.msra.gmra.mxu0 %v517_v8 }
 0x22b   :  { %v457_v14 = vadd.f32 %v1305_v58, %v456_v13  ;;  %v507_v15 = vmax.f32 %v465_v11, 0.0  ;;  %1557 = vmatpush3.bf16.msra.mxu0 %v1662_v57 }
 0x22c   :  { %v1486_v17 = vpop.f32.mrf.mxu1  ;;  %1558 = vmatprep.subr.bf16.mxu0 %v1663_v59 }
 0x22d   :  { %v505_v19 = vmax.f32 %v457_v14, 0.0  ;;  %v519_v23 = vpack.c.bf16 %v507_v15, %v506_v20  ;;  %v478_v27 = vadd.f32 %v1486_v17, %v1305_v58 }
 0x22e   :  { %v469_v21 = vpop.f32.mrf.mxu1 }
 0x22f   :  { %v518_v22 = vpack.c.bf16 %v505_v19, %v504_v18  ;;  %v470_v25 = vadd.f32 %v1305_v58, %v469_v21  ;;  %v510_v34 = vmax.f32 %v478_v27, 0.0  ;;  %1559 = vmatpush3.bf16.msra.mxu0 %v1663_v59 }
 0x230   :  { %v1487_v24 = vpop.f32.mrf.mxu1  ;;  %1560 = vmatprep.subr.bf16.mxu0 %v1664_v60 }
 0x231   :  { %v481_v26 = vadd.f32 %v1487_v24, %v1305_v58  ;;  %1512 = vmatprep.mubr.bf16.mxu0 %v518_v22  ;;  %v508_v32 = vmax.f32 %v470_v25, 0.0  ;;  %v1668_v24 = vld [vmem:[#allocation10 + $0x8] sm:$0xff]   ;;  %v1669_v25 = vld [vmem:[#allocation10] sm:$0xff]  }
 0x232   :  { %v472_v28 = vpop.f32.mrf.mxu1  ;;  %1513 = vmatmul.mubr.bf16.gmra.mxu0 %v519_v23  ;;  %v1667_v23 = vld [vmem:[#allocation10 + $0x10] sm:$0xff]  }
 0x233   :  { %v473_v29 = vadd.f32 %v1305_v58, %v472_v28  ;;  %v511_v30 = vmax.f32 %v481_v26, 0.0  ;;  %1561 = vmatpush3.bf16.msra.mxu0 %v1664_v60  ;;  %v1322_v28 = vld [vmem:[%s2088_s5] ss:$0 sm:$0xff] }
 0x234   :  { %v1490_v31 = vpop.f32.mrf.mxu1  ;;  %1562 = vmatprep.subr.bf16.mxu0 %v1665_v61 }
 0x235   :  { %v509_v33 = vmax.f32 %v473_v29, 0.0  ;;  %v521_v37 = vpack.c.bf16 %v511_v30, %v510_v34  ;;  %v494_v41 = vadd.f32 %v1490_v31, %v1305_v58 }
 0x236   :  { %v485_v35 = vpop.f32.mrf.mxu1 }
 0x237   :  { %v520_v36 = vpack.c.bf16 %v509_v33, %v508_v32  ;;  %v486_v39 = vadd.f32 %v1305_v58, %v485_v35  ;;  %v514_v54 = vmax.f32 %v494_v41, 0.0  ;;  %1563 = vmatpush3.bf16.msra.mxu0 %v1665_v61 }
 0x238   :  { %v1491_v38 = vpop.f32.mrf.mxu1 }
 0x239   :  { %v497_v40 = vadd.f32 %v1491_v38, %v1305_v58  ;;  %1516 = vmatprep.mubr.bf16.mxu0 %v520_v36  ;;  %v512_v45 = vmax.f32 %v486_v39, 0.0 }
 0x23a   :  { %v488_v42 = vpop.f32.mrf.mxu1  ;;  %1517 = vmatmul.mubr.bf16.gmra.mxu0 %v521_v37 }
 0x23b   :  { %v489_v43 = vadd.f32 %v1305_v58, %v488_v42  ;;  %v515_v44 = vmax.f32 %v497_v40, 0.0  ;;  %v1666_v58 = vld [vmem:[#allocation10 + $0x18] sm:$0xff]  }
 0x23c   :  { %1564 = vmatprep.subr.bf16.mxu0 %v1666_v58 }
 0x23d   :  { %v513_v53 = vmax.f32 %v489_v43, 0.0  ;;  %v523_v56 = vpack.c.bf16 %v515_v44, %v514_v54  ;;  %1565 = vmatpush3.bf16.msra.mxu0 %v1666_v58 }
 0x23e   :  { %1566 = vmatprep.subr.bf16.mxu0 %v1667_v23 }
 0x23f   :  { %v522_v55 = vpack.c.bf16 %v513_v53, %v512_v45 }
 0x241   :  { %1520 = vmatprep.mubr.bf16.mxu0 %v522_v55  ;;  %1567 = vmatpush3.bf16.msra.mxu0 %v1667_v23 }
 0x242   :  { %1521 = vmatmul.mubr.bf16.gmra.mxu0 %v523_v56  ;;  %1568 = vmatprep.subr.bf16.mxu0 %v1668_v24 }
 0x245   :  { %1569 = vmatpush3.bf16.msra.mxu0 %v1668_v24 }
 0x246   :  { %1570 = vmatprep.subr.bf16.mxu0 %v1669_v25 }
 0x249   :  { %1571 = vmatpush3.bf16.msra.mxu0 %v1669_v25 }
 0x2ea   :  { %v1510_v62 = vpop.f32.mrf.mxu0 }
 0x2ec   :  { %v623_v63 = vpop.f32.mrf.mxu0 }
 0x2ee   :  { %v1511_v0 = vpop.f32.mrf.mxu0 }
 0x2ef   :  { %v687_v21 = vpack.c.bf16 %v1511_v0, %v1510_v62 }
 0x2f0   :  { %v626_v1 = vpop.f32.mrf.mxu0 }
 0x2f1   :  { %v686_v22 = vpack.c.bf16 %v626_v1, %v623_v63 }
 0x2f2   :  { %v1514_v2 = vpop.f32.mrf.mxu0 }
 0x2f4   :  { %v639_v3 = vpop.f32.mrf.mxu0 }
 0x2f6   :  { %v1515_v4 = vpop.f32.mrf.mxu0 }
 0x2f7   :  { %v689_v19 = vpack.c.bf16 %v1515_v4, %v1514_v2 }
 0x2f8   :  { %v642_v5 = vpop.f32.mrf.mxu0 }
 0x2f9   :  { %v688_v20 = vpack.c.bf16 %v642_v5, %v639_v3 }
 0x2fa   :  { %v1518_v6 = vpop.f32.mrf.mxu0 }
 0x2fc   :  { %v655_v7 = vpop.f32.mrf.mxu0 }
 0x2fe   :  { %v1519_v8 = vpop.f32.mrf.mxu0 }
 0x2ff   :  { %v691_v17 = vpack.c.bf16 %v1519_v8, %v1518_v6 }
 0x300   :  { %v658_v9 = vpop.f32.mrf.mxu0 }
 0x301   :  { %v690_v18 = vpack.c.bf16 %v658_v9, %v655_v7 }
 0x302   :  { %v1522_v10 = vpop.f32.mrf.mxu0 }
 0x304   :  { %v671_v11 = vpop.f32.mrf.mxu0 }
 0x306   :  { %v1523_v12 = vpop.f32.mrf.mxu0 }
 0x307   :  { %v693_v13 = vpack.c.bf16 %v1523_v12, %v1522_v10 }
 0x308   :  { %v674_v14 = vpop.f32.mrf.mxu0 }
 0x309   :  { %v692_v15 = vpack.c.bf16 %v674_v14, %v671_v11  ;;  %1524 = vmatprep.subr.bf16.mxu1 %v693_v13 }
 0x30a   :  { %1525 = vmatpush3.bf16.msra.mxu1 %v693_v13 }
 0x30b   :  { %1526 = vmatprep.subr.bf16.mxu1 %v692_v15 }
 0x30e   :  { %1527 = vmatpush3.bf16.msra.mxu1 %v692_v15 }
 0x30f   :  { %1528 = vmatprep.subr.bf16.mxu1 %v691_v17 }
 0x312   :  { %1529 = vmatpush3.bf16.msra.mxu1 %v691_v17 }
 0x313   :  { %1530 = vmatprep.subr.bf16.mxu1 %v690_v18 }
 0x316   :  { %1531 = vmatpush3.bf16.msra.mxu1 %v690_v18 }
 0x317   :  { %1532 = vmatprep.subr.bf16.mxu1 %v689_v19 }
 0x31a   :  { %1533 = vmatpush3.bf16.msra.mxu1 %v689_v19 }
 0x31b   :  { %1534 = vmatprep.subr.bf16.mxu1 %v688_v20 }
 0x31e   :  { %1535 = vmatpush3.bf16.msra.mxu1 %v688_v20 }
 0x31f   :  { %1536 = vmatprep.subr.bf16.mxu1 %v687_v21 }
 0x322   :  { %1537 = vmatpush3.bf16.msra.mxu1 %v687_v21 }
 0x323   :  { %1538 = vmatprep.subr.bf16.mxu1 %v686_v22 }
 0x326   :  { %1539 = vmatpush3.bf16.msra.mxu1 %v686_v22 }
 0x329   :  { %1541 = vmatmul.mubr.bf16.vlgmr.msra.gmra.mxu1 %v1950_v46 }
 0x32a   :  { %1544 = vmatprep.mubr.bf16.mxu1 %v1952_v47 }
 0x331   :  { %1545 = vmatmul.mubr.bf16.gmra.mxu1 %v1956_v48 }
 0x332   :  { %1548 = vmatprep.mubr.bf16.mxu1 %v1958_v49 }
 0x339   :  { %1549 = vmatmul.mubr.bf16.gmra.mxu1 %v1962_v50 }
 0x33a   :  { %1552 = vmatprep.mubr.bf16.mxu1 %v1964_v51 }
 0x341   :  { %1553 = vmatmul.mubr.bf16.gmra.mxu1 %v1968_v52 }
 0x342   :  { %1604 = vmatprep.mubr.bf16.mxu1 %v1947_v16 }
 0x3e9   :  { %v1542_v26 = vpop.f32.mrf.mxu1 }
 0x3ea   :  { %v743_v32 = vadd.f32 %v1542_v26, %v1322_v28 }
 0x3eb   :  { %v734_v27 = vpop.f32.mrf.mxu1 }
 0x3ec   :  { %v735_v30 = vadd.f32 %v1322_v28, %v734_v27  ;;  %v799_v38 = vmax.f32 %v743_v32, 0.0 }
 0x3ed   :  { %v1543_v29 = vpop.f32.mrf.mxu1 }
 0x3ee   :  { %v746_v31 = vadd.f32 %v1543_v29, %v1322_v28  ;;  %v797_v36 = vmax.f32 %v735_v30, 0.0 }
 0x3ef   :  { %v737_v16 = vpop.f32.mrf.mxu1 }
 0x3f0   :  { %v738_v33 = vadd.f32 %v1322_v28, %v737_v16  ;;  %v800_v34 = vmax.f32 %v746_v31, 0.0 }
 0x3f1   :  { %v1546_v35 = vpop.f32.mrf.mxu1 }
 0x3f2   :  { %v798_v37 = vmax.f32 %v738_v33, 0.0  ;;  %v814_v41 = vpack.c.bf16 %v800_v34, %v799_v38  ;;  %v759_v45 = vadd.f32 %v1546_v35, %v1322_v28 }
 0x3f3   :  { %v750_v39 = vpop.f32.mrf.mxu1 }
 0x3f4   :  { %v813_v40 = vpack.c.bf16 %v798_v37, %v797_v36  ;;  %v751_v43 = vadd.f32 %v1322_v28, %v750_v39  ;;  %v803_v60 = vmax.f32 %v759_v45, 0.0 }
 0x3f5   :  { %v1547_v42 = vpop.f32.mrf.mxu1 }
 0x3f6   :  { %v762_v44 = vadd.f32 %v1547_v42, %v1322_v28  ;;  %1572 = vmatprep.mubr.bf16.mxu0 %v813_v40  ;;  %v801_v57 = vmax.f32 %v751_v43, 0.0 }
 0x3f7   :  { %v753_v53 = vpop.f32.mrf.mxu1  ;;  %1573 = vmatmul.mubr.bf16.vlgmr.msra.gmra.mxu0 %v814_v41 }
 0x3f8   :  { %v754_v54 = vadd.f32 %v1322_v28, %v753_v53  ;;  %v804_v55 = vmax.f32 %v762_v44, 0.0 }
 0x3f9   :  { %v1550_v56 = vpop.f32.mrf.mxu1 }
 0x3fa   :  { %v802_v59 = vmax.f32 %v754_v54, 0.0  ;;  %v816_v62 = vpack.c.bf16 %v804_v55, %v803_v60  ;;  %v775_v2 = vadd.f32 %v1550_v56, %v1322_v28  ;;  %v1331_v56 = vld [vmem:[%s2090_s7] ss:$0 sm:$0xff]  ;;  %s1869_s7 = smov [#allocation11]  }
 0x3fb   :  { %v766_v61 = vpop.f32.mrf.mxu1  ;;  %s1275_s9 = sshll.u32 %s1869_s7, 4  ;;  %s1276_s9 = int_to_ptr.vmem [resolvable:$true] %s1275_s9 }
 0x3fc   :  { %v815_v58 = vpack.c.bf16 %v802_v59, %v801_v57  ;;  %v767_v0 = vadd.f32 %v1322_v28, %v766_v61  ;;  %v807_v9 = vmax.f32 %v775_v2, 0.0  ;;  %s1834_s10 = scalar_lea.vmem %s1276_s9, 2048  ;;  %p1839_p12 = scmp.lt.s32.totalorder %s1276_s9, %s1276_s9 }
 0x3fd   :  { %v1551_v63 = vpop.f32.mrf.mxu1  ;;  %p1835_p11 = scmp.ne.s32.totalorder %s1276_s9, %s1834_s10  ;;  %p1840_p13 = scmp.lt.s32.totalorder %s1834_s10, %s1834_s10 }
 0x3fe   :  { %v778_v1 = vadd.f32 %v1551_v63, %v1322_v28  ;;  %1576 = vmatprep.mubr.bf16.mxu0 %v815_v58  ;;  %v805_v7 = vmax.f32 %v767_v0, 0.0 }
 0x3ff   :  { %v769_v3 = vpop.f32.mrf.mxu1  ;;  %1577 = vmatmul.mubr.bf16.gmra.mxu0 %v816_v62  ;;  %p1841_p0 = por %p1840_p13, %p1839_p12 }
 0x400   :  { %v770_v4 = vadd.f32 %v1322_v28, %v769_v3  ;;  %v808_v5 = vmax.f32 %v778_v1, 0.0 }
 0x401   :  { %v1554_v6 = vpop.f32.mrf.mxu1  ;;  %p1842_p1 = pnand %p1841_p0, %p1835_p11 }
 0x402   :  { %v806_v8 = vmax.f32 %v770_v4, 0.0  ;;  %v818_v12 = vpack.c.bf16 %v808_v5, %v807_v9  ;;  %v791_v17 = vadd.f32 %v1554_v6, %v1322_v28 }
 0x403   :  { %v782_v10 = vpop.f32.mrf.mxu1 }
 0x404   :  { %v817_v11 = vpack.c.bf16 %v806_v8, %v805_v7  ;;  %v783_v14 = vadd.f32 %v1322_v28, %v782_v10  ;;  %v811_v23 = vmax.f32 %v791_v17, 0.0 }
 0x405   :  { %v1555_v13 = vpop.f32.mrf.mxu1 }
 0x406   :  { %v794_v15 = vadd.f32 %v1555_v13, %v1322_v28  ;;  %1580 = vmatprep.mubr.bf16.mxu0 %v817_v11  ;;  %v809_v21 = vmax.f32 %v783_v14, 0.0 }
 0x407   :  { %v785_v18 = vpop.f32.mrf.mxu1  ;;  %1581 = vmatmul.mubr.bf16.gmra.mxu0 %v818_v12 }
 0x408   :  { %v786_v19 = vadd.f32 %v1322_v28, %v785_v18  ;;  %v812_v20 = vmax.f32 %v794_v15, 0.0 }
 0x40a   :  { %v810_v22 = vmax.f32 %v786_v19, 0.0  ;;  %v820_v25 = vpack.c.bf16 %v812_v20, %v811_v23 }
 0x40c   :  { %v819_v24 = vpack.c.bf16 %v810_v22, %v809_v21 }
 0x40e   :  { %1584 = vmatprep.mubr.bf16.mxu0 %v819_v24 }
 0x40f   :  { %1585 = vmatmul.mubr.bf16.gmra.mxu0 %v820_v25 }
 0x4b7   :  { %v1574_v26 = vpop.f32.mrf.mxu0 }
 0x4b9   :  { %v920_v27 = vpop.f32.mrf.mxu0 }
 0x4bb   :  { %v1575_v29 = vpop.f32.mrf.mxu0 }
 0x4bc   :  { %v984_v54 = vpack.c.bf16 %v1575_v29, %v1574_v26 }
 0x4bd   :  { %v923_v30 = vpop.f32.mrf.mxu0 }
 0x4be   :  { %v983_v55 = vpack.c.bf16 %v923_v30, %v920_v27 }
 0x4bf   :  { %v1578_v31 = vpop.f32.mrf.mxu0 }
 0x4c1   :  { %v936_v32 = vpop.f32.mrf.mxu0 }
 0x4c3   :  { %v1579_v16 = vpop.f32.mrf.mxu0 }
 0x4c4   :  { %v986_v45 = vpack.c.bf16 %v1579_v16, %v1578_v31 }
 0x4c5   :  { %v939_v33 = vpop.f32.mrf.mxu0 }
 0x4c6   :  { %v985_v53 = vpack.c.bf16 %v939_v33, %v936_v32 }
 0x4c7   :  { %v1582_v34 = vpop.f32.mrf.mxu0 }
 0x4c9   :  { %v952_v35 = vpop.f32.mrf.mxu0 }
 0x4cb   :  { %v1583_v36 = vpop.f32.mrf.mxu0 }
 0x4cc   :  { %v988_v43 = vpack.c.bf16 %v1583_v36, %v1582_v34 }
 0x4cd   :  { %v955_v28 = vpop.f32.mrf.mxu0 }
 0x4ce   :  { %v987_v44 = vpack.c.bf16 %v955_v28, %v952_v35 }
 0x4cf   :  { %v1586_v37 = vpop.f32.mrf.mxu0 }
 0x4d1   :  { %v968_v38 = vpop.f32.mrf.mxu0 }
 0x4d3   :  { %v1587_v39 = vpop.f32.mrf.mxu0 }
 0x4d4   :  { %v990_v40 = vpack.c.bf16 %v1587_v39, %v1586_v37 }
 0x4d5   :  { %v971_v41 = vpop.f32.mrf.mxu0 }
 0x4d6   :  { %v989_v42 = vpack.c.bf16 %v971_v41, %v968_v38  ;;  %1588 = vmatprep.subr.bf16.mxu1 %v990_v40 }
 0x4d7   :  { %1589 = vmatpush3.bf16.msra.mxu1 %v990_v40 }
 0x4d8   :  { %1590 = vmatprep.subr.bf16.mxu1 %v989_v42 }
 0x4db   :  { %1591 = vmatpush3.bf16.msra.mxu1 %v989_v42 }
 0x4dc   :  { %1592 = vmatprep.subr.bf16.mxu1 %v988_v43 }
 0x4df   :  { %1593 = vmatpush3.bf16.msra.mxu1 %v988_v43 }
 0x4e0   :  { %1594 = vmatprep.subr.bf16.mxu1 %v987_v44 }
 0x4e3   :  { %1595 = vmatpush3.bf16.msra.mxu1 %v987_v44 }
 0x4e4   :  { %1596 = vmatprep.subr.bf16.mxu1 %v986_v45 }
 0x4e7   :  { %1597 = vmatpush3.bf16.msra.mxu1 %v986_v45 }
 0x4e8   :  { %1598 = vmatprep.subr.bf16.mxu1 %v985_v53 }
 0x4eb   :  { %1599 = vmatpush3.bf16.msra.mxu1 %v985_v53 }
 0x4ec   :  { %1600 = vmatprep.subr.bf16.mxu1 %v984_v54 }
 0x4ef   :  { %1601 = vmatpush3.bf16.msra.mxu1 %v984_v54 }
 0x4f0   :  { %1602 = vmatprep.subr.bf16.mxu1 %v983_v55 }
 0x4f3   :  { %1603 = vmatpush3.bf16.msra.mxu1 %v983_v55 }
 0x4f6   :  { %1605 = vmatmul.mubr.bf16.vlgmr.msra.gmra.mxu1 %v1950_v46 }
 0x4f7   :  { %1608 = vmatprep.mubr.bf16.mxu1 %v1952_v47 }
 0x4fe   :  { %1609 = vmatmul.mubr.bf16.gmra.mxu1 %v1956_v48 }
 0x4ff   :  { %1612 = vmatprep.mubr.bf16.mxu1 %v1958_v49 }
 0x506   :  { %1613 = vmatmul.mubr.bf16.gmra.mxu1 %v1962_v50 }
 0x507   :  { %1616 = vmatprep.mubr.bf16.mxu1 %v1964_v51 }
 0x50e   :  { %1617 = vmatmul.mubr.bf16.gmra.mxu1 %v1968_v52 }
 0x5b6   :  { %v1606_v57 = vpop.f32.mrf.mxu1 }
 0x5b7   :  { %v1040_v59 = vadd.f32 %v1606_v57, %v1331_v56 }
 0x5b8   :  { %v1031_v60 = vpop.f32.mrf.mxu1 }
 0x5b9   :  { %v1032_v46 = vadd.f32 %v1331_v56, %v1031_v60  ;;  %1098 = vmax.xlane.f32.xlu1 %v1040_v59 }
 0x5ba   :  { %v1607_v47 = vpop.f32.mrf.mxu1 }
 0x5bb   :  { %v1043_v61 = vadd.f32 %v1607_v47, %v1331_v56  ;;  %1094 = vmax.xlane.f32.xlu0 %v1032_v46 }
 0x5bc   :  { %v1034_v48 = vpop.f32.mrf.mxu1 }
 0x5bd   :  { %v1035_v49 = vadd.f32 %v1331_v56, %v1034_v48  ;;  %1100 = vmax.xlane.f32.xlu1 %v1043_v61 }
 0x5be   :  { %v1610_v50 = vpop.f32.mrf.mxu1 }
 0x5bf   :  { %1096 = vmax.xlane.f32.xlu0 %v1035_v49  ;;  %v1056_v58 = vadd.f32 %v1610_v50, %v1331_v56 }
 0x5c0   :  { %v1047_v51 = vpop.f32.mrf.mxu1 }
 0x5c1   :  { %v1048_v0 = vadd.f32 %v1331_v56, %v1047_v51 }
 0x5c2   :  { %v1611_v52 = vpop.f32.mrf.mxu1 }
 0x5c3   :  { %v1059_v62 = vadd.f32 %v1611_v52, %v1331_v56  ;;  %1106 = vmax.xlane.f32.xlu0 %v1056_v58 }
 0x5c4   :  { %v1050_v63 = vpop.f32.mrf.mxu1 }
 0x5c5   :  { %1108 = vmax.xlane.f32.xlu1 %v1059_v62  ;;  %v1051_v2 = vadd.f32 %v1331_v56, %v1050_v63 }
 0x5c6   :  { %v1614_v1 = vpop.f32.mrf.mxu1 }
 0x5c7   :  { %1102 = vmax.xlane.f32.xlu0 %v1048_v0  ;;  %v1072_v4 = vadd.f32 %v1614_v1, %v1331_v56 }
 0x5c8   :  { %v1063_v3 = vpop.f32.mrf.mxu1 }
 0x5c9   :  { %1104 = vmax.xlane.f32.xlu1 %v1051_v2  ;;  %v1064_v8 = vadd.f32 %v1331_v56, %v1063_v3 }
 0x5ca   :  { %v1615_v5 = vpop.f32.mrf.mxu1 }
 0x5cb   :  { %v1075_v6 = vadd.f32 %v1615_v5, %v1331_v56  ;;  %1114 = vmax.xlane.f32.xlu0 %v1072_v4 }
 0x5cc   :  { %v1066_v7 = vpop.f32.mrf.mxu1 }
 0x5cd   :  { %1116 = vmax.xlane.f32.xlu1 %v1075_v6  ;;  %v1996_v10 = vadd.f32 %v1331_v56, %v1066_v7 }
 0x5ce   :  { %v1618_v9 = vpop.f32.mrf.mxu1 }
 0x5cf   :  { %1110 = vmax.xlane.f32.xlu0 %v1064_v8  ;;  %v2002_v15 = vadd.f32 %v1618_v9, %v1331_v56 }
 0x5d0   :  { %v1079_v11 = vpop.f32.mrf.mxu1 }
 0x5d1   :  { %v1998_v12 = vadd.f32 %v1331_v56, %v1079_v11  ;;  %1112 = vmax.xlane.f32.xlu1 %v1996_v10 }
 0x5d2   :  { %v1619_v13 = vpop.f32.mrf.mxu1 }
 0x5d3   :  { %1118 = vmax.xlane.f32.xlu0 %v1998_v12  ;;  %v2008_v18 = vadd.f32 %v1619_v13, %v1331_v56 }
 0x5d4   :  { %v1082_v14 = vpop.f32.mrf.mxu1 }
 0x5d5   :  { %v2004_v17 = vadd.f32 %v1331_v56, %v1082_v14 }
 0x5d7   :  { %1120 = vmax.xlane.f32.xlu1 %v2004_v17  ;;  %1122 = vmax.xlane.f32.xlu0 %v2002_v15 }
 0x5db   :  { %1124 = vmax.xlane.f32.xlu1 %v2008_v18 }
 0x642   :  { %v1099_v19 = vpop.xlane.xlu1 %1098 }
 0x643   :  { %v2011_v20 = vsub.f32 %v1040_v59, %v1099_v19 }
 0x644   :  { %v1095_v21 = vpop.xlane.xlu0 %1094 }
 0x645   :  { %v1146_v22 = vmul.f32 1.442695, %v2011_v20  ;;  %v2014_v23 = vsub.f32 %v1032_v46, %v1095_v21 }
 0x646   :  { %v1101_v24 = vpop.xlane.xlu1 %1100 }
 0x647   :  { %1670 = vpow2.f32 %v1146_v22  ;;  %v1142_v25 = vmul.f32 1.442695, %v2014_v23  ;;  %v2017_v26 = vsub.f32 %v1043_v61, %v1101_v24 }
 0x648   :  { %v1097_v27 = vpop.xlane.xlu0 %1096 }
 0x649   :  { %v1148_v29 = vmul.f32 1.442695, %v2017_v26  ;;  %v2020_v30 = vsub.f32 %v1035_v49, %v1097_v27  ;;  %1672 = vpow2.f32 %v1142_v25 }
 0x64b   :  { %1674 = vpow2.f32 %v1148_v29  ;;  %v1144_v31 = vmul.f32 1.442695, %v2020_v30 }
 0x64c   :  { %v1107_v32 = vpop.xlane.xlu0 %1106 }
 0x64d   :  { %v2023_v16 = vsub.f32 %v1056_v58, %v1107_v32  ;;  %1676 = vpow2.f32 %v1144_v31 }
 0x64e   :  { %v1109_v33 = vpop.xlane.xlu1 %1108 }
 0x64f   :  { %v1154_v34 = vmul.f32 1.442695, %v2023_v16  ;;  %v2026_v35 = vsub.f32 %v1059_v62, %v1109_v33 }
 0x650   :  { %v1103_v36 = vpop.xlane.xlu0 %1102 }
 0x651   :  { %1678 = vpow2.f32 %v1154_v34  ;;  %v1156_v28 = vmul.f32 1.442695, %v2026_v35  ;;  %v2029_v37 = vsub.f32 %v1048_v0, %v1103_v36 }
 0x652   :  { %v1105_v38 = vpop.xlane.xlu1 %1104 }
 0x653   :  { %1680 = vpow2.f32 %v1156_v28  ;;  %v1150_v39 = vmul.f32 1.442695, %v2029_v37  ;;  %v2032_v40 = vsub.f32 %v1051_v2, %v1105_v38 }
 0x654   :  { %v1671_v41 = vpop.eup %1670  ;;  %v1115_v42 = vpop.xlane.xlu0 %1114 }
 0x655   :  { %1682 = vpow2.f32 %v1150_v39  ;;  %v1152_v43 = vmul.f32 1.442695, %v2032_v40  ;;  %v2035_v44 = vsub.f32 %v1072_v4, %v1115_v42  ;;  %1178 = vadd.xlane.f32.xlu0 %v1671_v41 }
 0x656   :  { %v1117_v45 = vpop.xlane.xlu1 %1116  ;;  %v1673_v53 = vpop.eup %1672 }
 0x657   :  { %1684 = vpow2.f32 %v1152_v43  ;;  %v1162_v54 = vmul.f32 1.442695, %v2035_v44  ;;  %v2038_v55 = vsub.f32 %v1075_v6, %v1117_v45 }
 0x658   :  { %v1675_v56 = vpop.eup %1674  ;;  %v1111_v57 = vpop.xlane.xlu0 %1110 }
 0x659   :  { %1686 = vpow2.f32 %v1162_v54  ;;  %v1164_v59 = vmul.f32 1.442695, %v2038_v55  ;;  %v2041_v60 = vsub.f32 %v1064_v8, %v1111_v57  ;;  %1180 = vadd.xlane.f32.xlu1 %v1675_v56  ;;  %1174 = vadd.xlane.f32.xlu0 %v1673_v53 }
 0x65a   :  { %v1113_v46 = vpop.xlane.xlu1 %1112  ;;  %v1677_v48 = vpop.eup %1676 }
 0x65b   :  { %1688 = vpow2.f32 %v1164_v59  ;;  %v1158_v47 = vmul.f32 1.442695, %v2041_v60  ;;  %v2045_v61 = vsub.f32 %v1996_v10, %v1113_v46 }
 0x65c   :  { %v1119_v49 = vpop.xlane.xlu0 %1118 }
 0x65d   :  { %1690 = vpow2.f32 %v1158_v47  ;;  %v1160_v50 = vmul.f32 1.442695, %v2045_v61  ;;  %v2049_v51 = vsub.f32 %v1998_v12, %v1119_v49  ;;  %1176 = vadd.xlane.f32.xlu1 %v1677_v48 }
 0x65e   :  { %v1679_v58 = vpop.eup %1678 }
 0x65f   :  { %1692 = vpow2.f32 %v1160_v50  ;;  %v1166_v52 = vmul.f32 1.442695, %v2049_v51  ;;  %1186 = vadd.xlane.f32.xlu0 %v1679_v58 }
 0x660   :  { %v1681_v62 = vpop.eup %1680  ;;  %v1121_v63 = vpop.xlane.xlu1 %1120 }
 0x661   :  { %v1123_v0 = vpop.xlane.xlu0 %1122  ;;  %1694 = vpow2.f32 %v1166_v52  ;;  %v2053_v1 = vsub.f32 %v2004_v17, %v1121_v63  ;;  %1188 = vadd.xlane.f32.xlu1 %v1681_v62 }
 0x662   :  { %v2056_v2 = vsub.f32 %v2002_v15, %v1123_v0  ;;  %v1683_v3 = vpop.eup %1682 }
 0x663   :  { %v1168_v4 = vmul.f32 1.442695, %v2053_v1  ;;  %1182 = vadd.xlane.f32.xlu0 %v1683_v3 }
 0x664   :  { %v1170_v5 = vmul.f32 1.442695, %v2056_v2  ;;  %v1685_v6 = vpop.eup %1684  ;;  %v1125_v7 = vpop.xlane.xlu1 %1124 }
 0x665   :  { %1696 = vpow2.f32 %v1168_v4  ;;  %v2061_v8 = vsub.f32 %v2008_v18, %v1125_v7  ;;  %1184 = vadd.xlane.f32.xlu1 %v1685_v6 }
 0x666   :  { %v1687_v9 = vpop.eup %1686  ;;  %1698 = vpow2.f32 %v1170_v5 }
 0x667   :  { %v1172_v10 = vmul.f32 1.442695, %v2061_v8  ;;  %1194 = vadd.xlane.f32.xlu0 %v1687_v9 }
 0x668   :  { %v1689_v11 = vpop.eup %1688 }
 0x669   :  { %1700 = vpow2.f32 %v1172_v10  ;;  %1196 = vadd.xlane.f32.xlu1 %v1689_v11 }
 0x66a   :  { %v1691_v12 = vpop.eup %1690 }
 0x66b   :  { %1190 = vadd.xlane.f32.xlu0 %v1691_v12 }
 0x66c   :  { %v1693_v13 = vpop.eup %1692 }
 0x66d   :  { %1192 = vadd.xlane.f32.xlu1 %v1693_v13 }
 0x66e   :  { %v1695_v14 = vpop.eup %1694 }
 0x66f   :  { %1198 = vadd.xlane.f32.xlu0 %v1695_v14 }
 0x672   :  { %v1697_v15 = vpop.eup %1696 }
 0x673   :  { %v1699_v17 = vpop.eup %1698  ;;  %1200 = vadd.xlane.f32.xlu1 %v1697_v15 }
 0x674   :  { %1202 = vadd.xlane.f32.xlu0 %v1699_v17 }
 0x676   :  { %v1701_v18 = vpop.eup %1700 }
 0x677   :  { %1204 = vadd.xlane.f32.xlu1 %v1701_v18 }
 0x6de   :  { %v1179_v19 = vpop.xlane.xlu0 %1178 }
 0x6df   :  { %1702 = vlog2.f32 %v1179_v19 }
 0x6e2   :  { %v1181_v21 = vpop.xlane.xlu1 %1180  ;;  %v1175_v22 = vpop.xlane.xlu0 %1174 }
 0x6e3   :  { %1704 = vlog2.f32 %v1181_v21 }
 0x6e4   :  { %1706 = vlog2.f32 %v1175_v22 }
 0x6e6   :  { %v1177_v24 = vpop.xlane.xlu1 %1176 }
 0x6e7   :  { %1708 = vlog2.f32 %v1177_v24 }
 0x6e8   :  { %v1187_v25 = vpop.xlane.xlu0 %1186 }
 0x6e9   :  { %1710 = vlog2.f32 %v1187_v25 }
 0x6ea   :  { %v1189_v27 = vpop.xlane.xlu1 %1188 }
 0x6eb   :  { %1712 = vlog2.f32 %v1189_v27 }
 0x6ec   :  { %v1703_v29 = vpop.eup %1702  ;;  %v1183_v31 = vpop.xlane.xlu0 %1182 }
 0x6ed   :  { %v1211_v32 = vmul.f32 0.6931472, %v1703_v29  ;;  %1714 = vlog2.f32 %v1183_v31 }
 0x6ee   :  { %v1185_v33 = vpop.xlane.xlu1 %1184 }
 0x6ef   :  { %v1240_v34 = vsub.f32 %v2011_v20, %v1211_v32  ;;  %1716 = vlog2.f32 %v1185_v33 }
 0x6f0   :  { %v1705_v36 = vpop.eup %1704  ;;  %v1195_v28 = vpop.xlane.xlu0 %1194 }
 0x6f1   :  { %v1707_v38 = vpop.eup %1706  ;;  %1256 = vst [vmem:[#allocation11 + $0x10] sm:$0xff] %v1240_v34  ;;  %v1213_v39 = vmul.f32 0.6931472, %v1705_v36  ;;  %1718 = vlog2.f32 %v1195_v28 }
 0x6f2   :  { %v1207_v41 = vmul.f32 0.6931472, %v1707_v38  ;;  %v1197_v42 = vpop.xlane.xlu1 %1196 }
 0x6f3   :  { %v1241_v43 = vsub.f32 %v2017_v26, %v1213_v39  ;;  %1720 = vlog2.f32 %v1197_v42 }
 0x6f4   :  { %v1709_v45 = vpop.eup %1708  ;;  %v1238_v53 = vsub.f32 %v2014_v23, %v1207_v41  ;;  %v1191_v54 = vpop.xlane.xlu0 %1190 }
 0x6f5   :  { %1257 = vst [vmem:[#allocation11 + $0x18] sm:$0xff] %v1241_v43  ;;  %v1209_v56 = vmul.f32 0.6931472, %v1709_v45  ;;  %1722 = vlog2.f32 %v1191_v54 }
 0x6f6   :  { %v1711_v20 = vpop.eup %1710  ;;  %1254 = vst [vmem:[#allocation11] sm:$0xff] %v1238_v53  ;;  %v1193_v57 = vpop.xlane.xlu1 %1192 }
 0x6f7   :  { %v1239_v59 = vsub.f32 %v2020_v30, %v1209_v56  ;;  %v1219_v46 = vmul.f32 0.6931472, %v1711_v20  ;;  %1724 = vlog2.f32 %v1193_v57 }
 0x6f8   :  { %v1713_v47 = vpop.eup %1712  ;;  %v1199_v48 = vpop.xlane.xlu0 %1198 }
 0x6f9   :  { %1255 = vst [vmem:[#allocation11 + $0x8] sm:$0xff] %v1239_v59  ;;  %v1244_v26 = vsub.f32 %v2023_v16, %v1219_v46  ;;  %v1221_v49 = vmul.f32 0.6931472, %v1713_v47  ;;  %1726 = vlog2.f32 %v1199_v48 }
 0x6fa   :  { %v1715_v50 = vpop.eup %1714 }
 0x6fb   :  { %1260 = vst [vmem:[#allocation11 + $0x30] sm:$0xff] %v1244_v26  ;;  %v1245_v23 = vsub.f32 %v2026_v35, %v1221_v49  ;;  %v1215_v58 = vmul.f32 0.6931472, %v1715_v50 }
 0x6fc   :  { %v1717_v52 = vpop.eup %1716  ;;  %v1201_v62 = vpop.xlane.xlu1 %1200 }
 0x6fd   :  { %1261 = vst [vmem:[#allocation11 + $0x38] sm:$0xff] %v1245_v23  ;;  %v1242_v63 = vsub.f32 %v2029_v37, %v1215_v58  ;;  %v1217_v30 = vmul.f32 0.6931472, %v1717_v52  ;;  %1728 = vlog2.f32 %v1201_v62  ;;  %v1203_v0 = vpop.xlane.xlu0 %1202 }
 0x6fe   :  { %v1719_v3 = vpop.eup %1718  ;;  %1730 = vlog2.f32 %v1203_v0 }
 0x6ff   :  { %1258 = vst [vmem:[#allocation11 + $0x20] sm:$0xff] %v1242_v63  ;;  %v1243_v16 = vsub.f32 %v2032_v40, %v1217_v30  ;;  %v1227_v4 = vmul.f32 0.6931472, %v1719_v3 }
 0x700   :  { %v1721_v5 = vpop.eup %1720  ;;  %v1205_v6 = vpop.xlane.xlu1 %1204 }
 0x701   :  { %1259 = vst [vmem:[#allocation11 + $0x28] sm:$0xff] %v1243_v16  ;;  %v1248_v35 = vsub.f32 %v2035_v44, %v1227_v4  ;;  %v1229_v7 = vmul.f32 0.6931472, %v1721_v5  ;;  %1732 = vlog2.f32 %v1205_v6 }
 0x702   :  { %v1723_v9 = vpop.eup %1722 }
 0x703   :  { %1264 = vst [vmem:[#allocation11 + $0x50] sm:$0xff] %v1248_v35  ;;  %v1249_v37 = vsub.f32 %v2038_v55, %v1229_v7  ;;  %v1223_v10 = vmul.f32 0.6931472, %v1723_v9 }
 0x704   :  { %v1725_v11 = vpop.eup %1724 }
 0x705   :  { %1265 = vst [vmem:[#allocation11 + $0x58] sm:$0xff] %v1249_v37  ;;  %v1246_v12 = vsub.f32 %v2041_v60, %v1223_v10  ;;  %v1225_v13 = vmul.f32 0.6931472, %v1725_v11 }
 0x706   :  { %v1727_v14 = vpop.eup %1726 }
 0x707   :  { %1262 = vst [vmem:[#allocation11 + $0x40] sm:$0xff] %v1246_v12  ;;  %v1247_v40 = vsub.f32 %v2045_v61, %v1225_v13  ;;  %v1231_v15 = vmul.f32 0.6931472, %v1727_v14 }
 0x709   :  { %1263 = vst [vmem:[#allocation11 + $0x48] sm:$0xff] %v1247_v40  ;;  %v1250_v44 = vsub.f32 %v2049_v51, %v1231_v15 }
 0x70a   :  { %v1729_v17 = vpop.eup %1728 }
 0x70b   :  { %v1731_v18 = vpop.eup %1730  ;;  %1266 = vst [vmem:[#allocation11 + $0x60] sm:$0xff] %v1250_v44  ;;  %v1233_v19 = vmul.f32 0.6931472, %v1729_v17 }
 0x70c   :  { %v1235_v21 = vmul.f32 0.6931472, %v1731_v18 }
 0x70d   :  { %v1251_v55 = vsub.f32 %v2053_v1, %v1233_v19 }
 0x70e   :  { %v1733_v22 = vpop.eup %1732  ;;  %v1252_v24 = vsub.f32 %v2056_v2, %v1235_v21 }
 0x70f   :  { %1267 = vst [vmem:[#allocation11 + $0x68] sm:$0xff] %v1251_v55  ;;  %v1237_v60 = vmul.f32 0.6931472, %v1733_v22 }
 0x710   :  { %1268 = vst [vmem:[#allocation11 + $0x70] sm:$0xff] %v1252_v24 }
 0x711   :  { %v1253_v61 = vsub.f32 %v2061_v8, %v1237_v60 }
 0x713   :  { %1269 = vst [vmem:[#allocation11 + $0x78] sm:$0xff] %v1253_v61 }
 0x714   :  { %1845 = shalt.err (!%p1842_p1)
}
 0x715   :  { %s1870_s11 = smov 128   ;;  %s1871_s12 = smov 8  }
 0x716   :  { %1281 = dma.vmem_to_hbm [thread:$0]  %s1276_s9, 2048, %s2091_s8, [#allocation4], %s1870_s11, %s1870_s11, %s1871_s12  }
 0x717   :  { %1860 = dma.done.wait [#allocation4], 2048  }
 0x718   :  { %1861 = vsyncadd [#allocation4], 4294965248 }
 0x719   :  { %1285 = vsyncpa [#allocation3], 1 }
 0x71a   :  { %1286 = vsyncpa [#allocation6], 1 }
 0x71b   :  { %1287 = vsyncpa [#allocation9], 1 }
 0x71c   :  { %1288 = vsyncpa [#allocation4], 1 }

</bundles_post_ra>
